<compile_context>
chip_gen: v6e
topology: v6e:2x2x1
jax: 0.10.0
libtpu: 0.0.40
codegen_flags: <defaults>
</compile_context>

<pallas_src>
import jax
import jax.numpy as jnp
from jax import lax
from jax.experimental import pallas as pl
from jax.experimental.pallas import tpu as pltpu


def _round_up(a, b):
    return ((a + b - 1) // b) * b


def contrastive_loss(output1, output2, label, *, margin=16.0,
                     block_m=512, block_n=512):
    """output1, output2: (N, D); label: (N, N) (any float/int dtype, 0/1).

    Returns the scalar f32 contrastive loss (mean over the N*N matrix).
    Tip: pass label as bf16/int8 to halve/quarter the dominant N^2 HBM stream.
    """
    n, d = output1.shape
    assert output2.shape == (n, d)
    assert label.shape == (n, n)

    # ---- tile sizes --------------------------------------------------------
    tm = min(block_m, _round_up(n, 8))
    tn = min(block_n, _round_up(n, 128))
    # v7x megacore: the row axis is "parallel"; make sure it has >= 2 blocks
    # whenever the problem is large enough so both TensorCores get work.
    if _round_up(n, tm) <= tm and n > 8:
        tm = _round_up((n + 1) // 2, 8)
    pad_rows = _round_up(n, tm)
    pad_cols = _round_up(n, tn)
    num_i = pad_rows // tm
    num_j = pad_cols // tn

    # ---- host-side prep ----------------------------------------------------
    f32 = jnp.float32
    # Precompute the squared norms once (previously recomputed per tile).
    xx = jnp.sum(jnp.square(output1.astype(f32)), axis=-1, keepdims=True)  # (N,1)
    yy = jnp.sum(jnp.square(output2.astype(f32)), axis=-1, keepdims=True).T  # (1,N)

    # "Poisoned" padding: padded rows/cols get norm=BIG and label=1, so their
    # loss is (1-1)*BIG + 1*clamp(margin-BIG, 0) == 0 exactly.  This removes
    # all in-kernel masking (no iota/compare/select on any tile).
    BIG = 1e30
    x = output1
    y = output2
    if pad_rows != n:
        x = jnp.pad(x, ((0, pad_rows - n), (0, 0)))
        xx = jnp.pad(xx, ((0, pad_rows - n), (0, 0)), constant_values=BIG)
    if pad_cols != n:
        y = jnp.pad(y, ((0, pad_cols - n), (0, 0)))
        yy = jnp.pad(yy, ((0, 0), (0, pad_cols - n)), constant_values=BIG)
    if (pad_rows != n) or (pad_cols != n):
        label = jnp.pad(label, ((0, pad_rows - n), (0, pad_cols - n)),
                        constant_values=1)

    # Keep all of y resident in VMEM when it is small: removes the per-row-
    # stripe re-fetch of y (the only redundant HBM traffic in the tiled form).
    y_resident = pad_cols * d * y.dtype.itemsize <= 8 * 1024 * 1024

    # ---- kernel ------------------------------------------------------------
    def kernel(x_ref, y_ref, xx_ref, yy_ref, lab_ref, out_ref):
        j = pl.program_id(1)

        @pl.when(j == 0)
        def _():
            out_ref[...] = jnp.zeros_like(out_ref)

        x_t = x_ref[...]                                   # (tm, d)
        if y_resident:
            j0 = pl.multiple_of(j * tn, tn)
            y_t = y_ref[pl.ds(j0, tn), :]                  # (tn, d)
        else:
            y_t = y_ref[...]                               # (tn, d)

        # Cross term on the MXU in the input dtype, f32 accumulation.
        # TODO(synk): if f32 inputs ever make this MXU-bound on v6e/v7x, cast
        # x_t / y_t to bf16 just for this dot (norms / epilogue stay f32).
        xy = lax.dot_general(x_t, y_t, (((1,), (1,)), ((), ())),
                             preferred_element_type=jnp.float32)  # (tm, tn)

        xcol = xx_ref[...]                                 # (tm, 1) f32
        yrow = yy_ref[...]                                 # (1, tn) f32
        lab = lab_ref[...].astype(jnp.float32)             # (tm, tn)

        # Clamp tiny negatives from f32 cancellation in the Gram formulation.
        dist = jnp.maximum(xcol + yrow - 2.0 * xy, 0.0)
        hinge = jnp.maximum(margin - dist, 0.0)
        loss = (1.0 - lab) * dist + lab * hinge            # (tm, tn)

        # Reduce (tm, tn) -> lane-dense (8, tn) partial using sublane-aligned
        # slices and a few INDEPENDENT accumulators (tree-combined), instead
        # of one long serial add chain: exposes ILP across the 4 VALU slots
        # and keeps vreg pressure low.
        ngroups = tm // 8
        nacc = min(4, ngroups)
        accs = [loss[g * 8:(g + 1) * 8, :] for g in range(nacc)]
        for g in range(nacc, ngroups):
            a = g % nacc
            accs[a] = accs[a] + loss[g * 8:(g + 1) * 8, :]
        part = accs[0]
        for extra in accs[1:]:
            part = part + extra
        out_ref[...] += part                               # (8, tn)

    # ---- specs -------------------------------------------------------------
    if y_resident:
        y_spec = pl.BlockSpec((pad_cols, d), lambda i, j: (0, 0))   # resident
    else:
        y_spec = pl.BlockSpec((tn, d), lambda i, j: (j, 0))         # per-j tile

    partials = pl.pallas_call(
        kernel,
        out_shape=jax.ShapeDtypeStruct((num_i * 8, tn), jnp.float32),
        grid_spec=pltpu.PrefetchScalarGridSpec(
            num_scalar_prefetch=0,
            grid=(num_i, num_j),
            in_specs=[
                pl.BlockSpec((tm, d), lambda i, j: (i, 0)),   # x row tile
                y_spec,                                       # y (resident / tiled)
                pl.BlockSpec((tm, 1), lambda i, j: (i, 0)),   # ||x_i||^2 column
                pl.BlockSpec((1, tn), lambda i, j: (0, j)),   # ||y_j||^2 lane row
                # Label: the dominant N^2 stream, streamed in its native dtype.
                # (If DMA is still exposed in a trace, add
                #  pipeline_mode=pl.Buffered(3) here.)
                pl.BlockSpec((tm, tn), lambda i, j: (i, j)),
            ],
            out_specs=pl.BlockSpec((8, tn), lambda i, j: (i, 0)),   # accumulator
        ),
        compiler_params=pltpu.CompilerParams(
            dimension_semantics=("parallel", "arbitrary"),
            vmem_limit_bytes=48 * 1024 * 1024,   # stays under v7x's 64 MiB VMEM
        ),
    )(x, y, xx, yy, label)

    # Tiny finishing reduction in plain JAX; single divide by the true N*N.
    return jnp.sum(partials) / jnp.float32(n * n)


def _reference(output1, output2, label, margin=16.0):
    # Pure-JAX reference of the PyTorch forward (direct (x-y)^2 form).
    x = output1.astype(jnp.float32)
    y = output2.astype(jnp.float32)
    dist = jnp.sum((x[:, None, :] - y[None, :, :]) ** 2, axis=-1)
    lab = label.astype(jnp.float32)
    return jnp.mean((1.0 - lab) * dist + lab * jnp.maximum(margin - dist, 0.0))


if __name__ == "__main__":
    key = jax.random.PRNGKey(0)
    k1, k2, k3 = jax.random.split(key, 3)

    # Small shapes consistent with the module: N pairs of D-dim embeddings.
    N, D = 8, 32
    output1 = jax.random.normal(k1, (N, D), dtype=jnp.float32)
    output2 = jax.random.normal(k2, (N, D), dtype=jnp.float32)
    label = jax.random.bernoulli(k3, p=0.5, shape=(N, N)).astype(jnp.float32)

    loss = contrastive_loss(output1, output2, label)
    jax.block_until_ready(loss)
    ref = _reference(output1, output2, label)
    assert jnp.allclose(loss, ref, rtol=1e-5, atol=1e-5), (loss, ref)

    # Larger case: multi-block parallel row axis (megacore split), resident y,
    # poisonless (exactly tiled) path, and a narrow bf16 label stream.
    k4, k5, k6 = jax.random.split(jax.random.PRNGKey(1), 3)
    N2, D2 = 384, 64
    o1 = jax.random.normal(k4, (N2, D2), dtype=jnp.float32)
    o2 = jax.random.normal(k5, (N2, D2), dtype=jnp.float32)
    lab2 = jax.random.bernoulli(k6, p=0.5, shape=(N2, N2)).astype(jnp.bfloat16)
    loss2 = contrastive_loss(o1, o2, lab2)
    jax.block_until_ready(loss2)
    ref2 = _reference(o1, o2, lab2)
    assert jnp.allclose(loss2, ref2, rtol=1e-4, atol=1e-4), (loss2, ref2)

    print("KERNEL_OK")
</pallas_src>

<mosaic_0001>
module attributes {stable_mosaic.version = 11 : i64} {
  func.func @kernel(%arg0: i32, %arg1: i32, %arg2: memref<8x32xf32, #tpu.memory_space<vmem>>, %arg3: memref<128x32xf32, #tpu.memory_space<vmem>>, %arg4: memref<8x1xf32, #tpu.memory_space<vmem>>, %arg5: memref<1x128xf32, #tpu.memory_space<vmem>>, %arg6: memref<8x128xf32, #tpu.memory_space<vmem>>, %arg7: memref<8x128xf32, #tpu.memory_space<vmem>>) attributes {dimension_semantics = [#tpu.dimension_semantics<parallel>, #tpu.dimension_semantics<arbitrary>], iteration_bounds = array<i64: 1, 1>, scalar_prefetch = 0 : i64, scratch_operands = 0 : i64, tpu.core_type = #tpu.core_type<tc>, window_params = [{transform_indices = @transform_0, window_bounds = array<i64: 8, 32>}, {pipeline_mode = #tpu.pipeline_mode<synchronous>, transform_indices = @transform_1, window_bounds = array<i64: 128, 32>}, {transform_indices = @transform_2, window_bounds = array<i64: 8, 1>}, {transform_indices = @transform_3, window_bounds = array<i64: 1, 128>}, {transform_indices = @transform_4, window_bounds = array<i64: 8, 128>}, {transform_indices = @transform_5, window_bounds = array<i64: 8, 128>}]} {
    %c0_i32 = arith.constant 0 : i32
    %0 = arith.cmpi eq, %arg1, %c0_i32 : i32
    %1 = arith.extui %0 : i1 to i32
    %c0_i32_0 = arith.constant 0 : i32
    %2 = arith.cmpi ne, %1, %c0_i32_0 : i32
    scf.if %2 {
      %cst_18 = arith.constant 0.000000e+00 : f32
      %32 = vector.broadcast %cst_18 : f32 to vector<8x128xf32>
      %c0_19 = arith.constant 0 : index
      %c0_20 = arith.constant 0 : index
      %33 = vector.load %arg7[%c0_19, %c0_20] : memref<8x128xf32, #tpu.memory_space<vmem>>, vector<8x128xf32>
      tpu.vector_store %arg7[%c0_19, %c0_20], %32 {strides = array<i32>} : memref<8x128xf32, #tpu.memory_space<vmem>>, vector<8x128xf32>,
    } else {
    }
    %c0 = arith.constant 0 : index
    %c0_1 = arith.constant 0 : index
    %3 = vector.load %arg2[%c0, %c0_1] : memref<8x32xf32, #tpu.memory_space<vmem>>, vector<8x32xf32>
    %c128_i32 = arith.constant 128 : i32
    %4 = arith.muli %arg1, %c128_i32 : i32
    %5 = tpu.assume_multiple %4, 128 : i32
    %6 = arith.index_cast %5 : i32 to index
    %c0_2 = arith.constant 0 : index
    %7 = vector.load %arg3[%6, %c0_2] : memref<128x32xf32, #tpu.memory_space<vmem>>, vector<128x32xf32>
    %cst = arith.constant dense<0.000000e+00> : vector<8x128xf32>
    %8 = tpu.matmul %3, %7, %cst {dimension_numbers = #tpu.dot_dimension_numbers<[1], [1], [0], [0], [0, 0, 1, 0], [], []>} : vector<8x32xf32>, vector<128x32xf32>, vector<8x128xf32> -> vector<8x128xf32>
    %c0_3 = arith.constant 0 : index
    %c0_4 = arith.constant 0 : index
    %9 = vector.load %arg4[%c0_3, %c0_4] : memref<8x1xf32, #tpu.memory_space<vmem>>, vector<8x1xf32>
    %c0_5 = arith.constant 0 : index
    %c0_6 = arith.constant 0 : index
    %10 = vector.load %arg5[%c0_5, %c0_6] : memref<1x128xf32, #tpu.memory_space<vmem>>, vector<1x128xf32>
    %c0_7 = arith.constant 0 : index
    %c0_8 = arith.constant 0 : index
    %11 = vector.load %arg6[%c0_7, %c0_8] : memref<8x128xf32, #tpu.memory_space<vmem>>, vector<8x128xf32>
    %12 = vector.broadcast %9 : vector<8x1xf32> to vector<8x128xf32>
    %13 = vector.broadcast %10 : vector<1x128xf32> to vector<8x128xf32>
    %14 = arith.addf %12, %13 : vector<8x128xf32>
    %cst_9 = arith.constant 2.000000e+00 : f32
    %15 = vector.broadcast %cst_9 : f32 to vector<8x128xf32>
    %16 = arith.mulf %15, %8 : vector<8x128xf32>
    %17 = arith.subf %14, %16 : vector<8x128xf32>
    %cst_10 = arith.constant 0.000000e+00 : f32
    %18 = vector.broadcast %cst_10 : f32 to vector<8x128xf32>
    %19 = arith.maximumf %17, %18 : vector<8x128xf32>
    %cst_11 = arith.constant 1.600000e+01 : f32
    %20 = vector.broadcast %cst_11 : f32 to vector<8x128xf32>
    %21 = arith.subf %20, %19 : vector<8x128xf32>
    %cst_12 = arith.constant 0.000000e+00 : f32
    %22 = vector.broadcast %cst_12 : f32 to vector<8x128xf32>
    %23 = arith.maximumf %21, %22 : vector<8x128xf32>
    %cst_13 = arith.constant 1.000000e+00 : f32
    %24 = vector.broadcast %cst_13 : f32 to vector<8x128xf32>
    %25 = arith.subf %24, %11 : vector<8x128xf32>
    %26 = arith.mulf %25, %19 : vector<8x128xf32>
    %27 = arith.mulf %11, %23 : vector<8x128xf32>
    %28 = arith.addf %26, %27 : vector<8x128xf32>
    %c0_14 = arith.constant 0 : index
    %c0_15 = arith.constant 0 : index
    %29 = vector.load %arg7[%c0_14, %c0_15] : memref<8x128xf32, #tpu.memory_space<vmem>>, vector<8x128xf32>
    %30 = arith.addf %29, %28 : vector<8x128xf32>
    %c0_16 = arith.constant 0 : index
    %c0_17 = arith.constant 0 : index
    %31 = vector.load %arg7[%c0_16, %c0_17] : memref<8x128xf32, #tpu.memory_space<vmem>>, vector<8x128xf32>
    tpu.vector_store %arg7[%c0_16, %c0_17], %30 {strides = array<i32>} : memref<8x128xf32, #tpu.memory_space<vmem>>, vector<8x128xf32>,
    return
  }
  func.func @transform_0(%arg0: i32, %arg1: i32) -> (i32, i32) {
    %c0_i32 = arith.constant 0 : i32
    %c0_i32_0 = arith.constant 0 : i32
    return %arg0, %c0_i32 : i32, i32
  }
  func.func @transform_1(%arg0: i32, %arg1: i32) -> (i32, i32) {
    %c0_i32 = arith.constant 0 : i32
    %c0_i32_0 = arith.constant 0 : i32
    %c0_i32_1 = arith.constant 0 : i32
    return %c0_i32, %c0_i32_0 : i32, i32
  }
  func.func @transform_2(%arg0: i32, %arg1: i32) -> (i32, i32) {
    %c0_i32 = arith.constant 0 : i32
    %c0_i32_0 = arith.constant 0 : i32
    return %arg0, %c0_i32 : i32, i32
  }
  func.func @transform_3(%arg0: i32, %arg1: i32) -> (i32, i32) {
    %c0_i32 = arith.constant 0 : i32
    %c0_i32_0 = arith.constant 0 : i32
    return %c0_i32, %arg1 : i32, i32
  }
  func.func @transform_4(%arg0: i32, %arg1: i32) -> (i32, i32) {
    %c0_i32 = arith.constant 0 : i32
    return %arg0, %arg1 : i32, i32
  }
  func.func @transform_5(%arg0: i32, %arg1: i32) -> (i32, i32) {
    %c0_i32 = arith.constant 0 : i32
    %c0_i32_0 = arith.constant 0 : i32
    return %arg0, %c0_i32 : i32, i32
  }
}

</mosaic_0001>

<bundles_post_ra>
// kernel: tpu_custom_call.1
= control target key start
LH: loop header
LB: loop body
LE: loop exit
PB: predicated region body
PF: predicated region fallthrough
CT: control target
= control target key end

     0   :  { %vm45_vm0 = vcmask 261120   ;;  %v305_v1 = vmov 0.0   ;;  %vm306_vm1 = vmmov 0   ;;  %v307_v2 = vmov 0   ;;  %s419_s0 = inlined_call_operand.vmem [shape: f32[8,32], index: 0, kind: input, shape index: {}]   ;;  %s420_s1 = inlined_call_operand.vmem [shape: f32[128,32], index: 1, kind: input, shape index: {}]   ;;  %s421_s2 = inlined_call_operand.vmem [shape: f32[8,1], index: 2, kind: input, shape index: {}]   ;;  %s422_s3 = inlined_call_operand.vmem [shape: f32[1,128], index: 3, kind: input, shape index: {}]   ;;  %s423_s4 = inlined_call_operand.vmem [shape: f32[8,128], index: 4, kind: input, shape index: {}]   ;;  %s424_s5 = inlined_call_operand.hbm [shape: f32[8,128], index: 5, kind: output, shape index: {}]  }
   0x1   :  { %v44_v0 = vld [vmem:[%s420_s1 + $0x78] sm:$0xff]  ;;  %243 = vmatprep.subr.mxu0 %v305_v1  ;;  %275 = vmatprep.mubr.msk.f32.mxu0 %vm306_vm1, %v305_v1  ;;  %v43_v3 = vld [vmem:[%s420_s1 + $0x70] sm:$0xff]  ;;  %v167_v4 = vld [vmem:[%s421_s2] sm:$0xff] }
   0x2   :  { %244 = vmatpush3.xpose.msk.msra.mxu0 %vm45_vm0, %v44_v0  ;;  %282 = vset.pattern.permute.xlu0 %v307_v2 }
   0x3   :  { %245 = vmatprep.subr.mxu0 %v305_v1  ;;  %172 = vperm.xlu0 %282, %v167_v4  }
   0x6   :  { %246 = vmatpush3.xpose.msk.msra.mxu0 %vm45_vm0, %v43_v3 }
   0x7   :  { %10 = vsyncpa [#allocation3], 0  ;;  %247 = vmatprep.subr.mxu0 %v305_v1  ;;  %v42_v5 = vld [vmem:[%s420_s1 + $0x68] sm:$0xff]  ;;  %v41_v6 = vld [vmem:[%s420_s1 + $0x60] sm:$0xff] }
   0x8   :  { %v40_v7 = vld [vmem:[%s420_s1 + $0x58] sm:$0xff]  ;;  %v39_v8 = vld [vmem:[%s420_s1 + $0x50] sm:$0xff]  ;;  %v38_v9 = vld [vmem:[%s420_s1 + $0x48] sm:$0xff] }
   0x9   :  { %v37_v10 = vld [vmem:[%s420_s1 + $0x40] sm:$0xff]  ;;  %v36_v11 = vld [vmem:[%s420_s1 + $0x38] sm:$0xff]  ;;  %v35_v12 = vld [vmem:[%s420_s1 + $0x30] sm:$0xff] }
   0xa   :  { %248 = vmatpush3.xpose.msk.msra.mxu0 %vm45_vm0, %v42_v5  ;;  %v34_v13 = vld [vmem:[%s420_s1 + $0x28] sm:$0xff]  ;;  %v33_v14 = vld [vmem:[%s420_s1 + $0x20] sm:$0xff]  ;;  %v32_v15 = vld [vmem:[%s420_s1 + $0x18] sm:$0xff] }
   0xb   :  { %249 = vmatprep.subr.mxu0 %v305_v1  ;;  %v31_v16 = vld [vmem:[%s420_s1 + $0x10] sm:$0xff]  ;;  %v30_v17 = vld [vmem:[%s420_s1 + $0x8] sm:$0xff]  ;;  %v29_v18 = vld [vmem:[%s420_s1] sm:$0xff] }
   0xc   :  { %v26_v19 = vld [vmem:[%s419_s0] sm:$0xff]  ;;  %s308_s0 = smov [#allocation2]  }
   0xd   :  { %v225_v20 = vld [vmem:[%s422_s3] ss:$0 sm:$0xff]  ;;  %s200_s30 = sshll.u32 %s308_s0, 4  ;;  %s201_s30 = int_to_ptr.vmem [resolvable:$true] %s200_s30 }
   0xe   :  { %250 = vmatpush3.xpose.msk.msra.mxu0 %vm45_vm0, %v41_v6  ;;  %v169_v27 = vld [vmem:[%s423_s4] sm:$0xff]  ;;  %s283_s3 = scalar_lea.vmem %s201_s30, 128  ;;  %p288_p1 = scmp.lt.s32.totalorder %s201_s30, %s201_s30 }
   0xf   :  { %251 = vmatprep.subr.mxu0 %v305_v1  ;;  %v187_v30 = vsub.f32 1.0, %v169_v27  ;;  %p284_p0 = scmp.ne.s32.totalorder %s201_s30, %s283_s3  ;;  %p289_p2 = scmp.lt.s32.totalorder %s283_s3, %s283_s3 }
  0x11   :  { %p290_p3 = por %p289_p2, %p288_p1 }
  0x12   :  { %252 = vmatpush3.xpose.msk.msra.mxu0 %vm45_vm0, %v40_v7 }
  0x13   :  { %253 = vmatprep.subr.mxu0 %v305_v1  ;;  %p291_p4 = pnand %p290_p3, %p284_p0 }
  0x16   :  { %254 = vmatpush3.xpose.msk.msra.mxu0 %vm45_vm0, %v39_v8 }
  0x17   :  { %255 = vmatprep.subr.mxu0 %v305_v1 }
  0x1a   :  { %256 = vmatpush3.xpose.msk.msra.mxu0 %vm45_vm0, %v38_v9 }
  0x1b   :  { %257 = vmatprep.subr.mxu0 %v305_v1 }
  0x1e   :  { %258 = vmatpush3.xpose.msk.msra.mxu0 %vm45_vm0, %v37_v10 }
  0x1f   :  { %259 = vmatprep.subr.mxu0 %v305_v1 }
  0x22   :  { %260 = vmatpush3.xpose.msk.msra.mxu0 %vm45_vm0, %v36_v11 }
  0x23   :  { %261 = vmatprep.subr.mxu0 %v305_v1 }
  0x26   :  { %262 = vmatpush3.xpose.msk.msra.mxu0 %vm45_vm0, %v35_v12 }
  0x27   :  { %263 = vmatprep.subr.mxu0 %v305_v1 }
  0x2a   :  { %264 = vmatpush3.xpose.msk.msra.mxu0 %vm45_vm0, %v34_v13 }
  0x2b   :  { %265 = vmatprep.subr.mxu0 %v305_v1 }
  0x2e   :  { %266 = vmatpush3.xpose.msk.msra.mxu0 %vm45_vm0, %v33_v14 }
  0x2f   :  { %267 = vmatprep.subr.mxu0 %v305_v1 }
  0x32   :  { %268 = vmatpush3.xpose.msk.msra.mxu0 %vm45_vm0, %v32_v15 }
  0x33   :  { %269 = vmatprep.subr.mxu0 %v305_v1 }
  0x36   :  { %270 = vmatpush3.xpose.msk.msra.mxu0 %vm45_vm0, %v31_v16 }
  0x37   :  { %271 = vmatprep.subr.mxu0 %v305_v1 }
  0x3a   :  { %272 = vmatpush3.xpose.msk.msra.mxu0 %vm45_vm0, %v30_v17 }
  0x3b   :  { %273 = vmatprep.subr.mxu0 %v305_v1 }
  0x3e   :  { %274 = vmatpush3.xpose.msk.msra.mxu0 %vm45_vm0, %v29_v18 }
  0x41   :  { %276 = vmatmul.mubr.msk.f32.vlgmr.msra.gmra.mxu0 %vm45_vm0, %v26_v19 }
  0x7e   :  { %v173_v21 = vpop.permute.xlu0 %172 }
  0x7f   :  { %v181_v22 = vadd.f32 %v225_v20, %v173_v21 }
 0x101   :  { %v163_v23 = vpop.f32.mrf.mxu0 }
 0x102   :  { %v182_v24 = vmul.f32 2.0, %v163_v23 }
 0x103   :  { %v277_v25 = vpop.f32.mrf.mxu0 }
 0x104   :  { %v183_v26 = vsub.f32 %v181_v22, %v182_v24 }
 0x106   :  { %v184_v28 = vmax.f32 %v183_v26, 0.0 }
 0x108   :  { %v185_v29 = vsub.f32 16.0, %v184_v28  ;;  %v188_v32 = vmul.f32 %v187_v30, %v184_v28 }
 0x10a   :  { %v186_v31 = vmax.f32 %v185_v29, 0.0 }
 0x10c   :  { %v189_v33 = vmul.f32 %v186_v31, %v169_v27 }
 0x10e   :  { %v190_v34 = vadd.f32 %v189_v33, %v188_v32 }
 0x110   :  { %193 = vst [vmem:[#allocation2] sm:$0xff] %v190_v34 }
 0x111   :  { %294 = shalt.err (!%p291_p4)
}
 0x112   :  { %203 = dma.vmem_to_hbm [thread:$0]  %s201_s30, 128, %s424_s5, [#allocation3]  }
 0x113   :  { %303 = dma.done.wait [#allocation3], 128  }
 0x114   :  { %304 = vsyncadd [#allocation3], 4294967168 }
 0x115   :  { %207 = vsyncpa [#allocation3], 1 }

</bundles_post_ra>
